<compile_context>
chip_gen: v7x
topology: tpu7x:2x2x1
jax: 0.10.0
libtpu: 0.0.40
codegen_flags: <defaults>
</compile_context>

<pallas_src>
import functools
import math

import jax
import jax.numpy as jnp
from jax.experimental import pallas as pl
from jax.experimental.pallas import tpu as pltpu


# ----------------------------------------------------------------------------- #
# Parameter glue (plain JAX) -- mirrors TransFcNorm.get_params()
# ----------------------------------------------------------------------------- #
def get_params(weight_small, bias_small, width_weight=None,
               residual_weight=None, residual_bias=None):
    weight = weight_small
    bias = bias_small
    if width_weight is not None:
        weight = jnp.concatenate([weight, width_weight @ weight_small], axis=0)
        bias = jnp.concatenate([bias, width_weight @ bias_small], axis=0)
    if residual_weight is not None:
        weight = weight + residual_weight
        bias = bias + residual_bias
    return weight, bias


# ----------------------------------------------------------------------------- #
# Pallas LayerNorm kernel (hot path)
# ----------------------------------------------------------------------------- #
def _layer_norm_kernel(x_ref, g_ref, b_ref, o_ref, *, eps, inv_h):
    x = x_ref[...].astype(jnp.float32)                 # one upcast, (TILE, H)

    # Single-pass stats: two cross-lane reductions (XLU slot).
    s1 = jnp.sum(x, axis=-1, keepdims=True)            # (TILE, 1)
    s2 = jnp.sum(x * x, axis=-1, keepdims=True)        # (TILE, 1)
    mean = s1 * inv_h
    var = s2 * inv_h - mean * mean
    var = jnp.maximum(var, 0.0)                        # guard cancellation -> negative var
    rstd = jax.lax.rsqrt(var + eps)                    # EUP slot

    # gamma/beta already f32 and VMEM-resident: 4 VPU ops/element apply path.
    y = (x - mean) * rstd * g_ref[...] + b_ref[...]
    o_ref[...] = y.astype(o_ref.dtype)                 # single downcast at the store


# ----------------------------------------------------------------------------- #
# Tiling helpers
# ----------------------------------------------------------------------------- #
def _round_up(x, m):
    return ((x + m - 1) // m) * m


def _vmem_capacity_bytes():
    try:
        return int(pltpu.get_tpu_info().vmem_capacity_bytes)
    except Exception:
        return 64 * 1024 * 1024       # conservative default (v7x-sized VMEM)


def _choose_tile_rows(rows, hidden, itemsize, vmem_cap):
    # Streaming budget for I/O + f32 temporaries, generation-aware.
    io_budget = (16 << 20) if vmem_cap <= (64 << 20) else (32 << 20)
    # Per row: double-buffered (in + out) tiles plus ~2 f32 temporaries backing
    # x_f32 / x*x / y inside the kernel.
    per_row = 4 * hidden * itemsize + 2 * hidden * 4
    cap_vmem = max(8, min(2048, (io_budget // per_row) // 8 * 8))

    tile = min(1024, cap_vmem)        # 512-1024-row tiles ~= 85% of HBM roofline

    # Guarantee a multi-step grid (v7x megacore sharding + DMA/compute overlap)
    # while keeping the tile above the bandwidth floor when rows allow.
    if rows >= 4 * 512:
        tile = min(tile, max(512, _round_up(pl.cdiv(rows, 8), 8)))
    elif rows >= 2 * 256:
        tile = min(tile, max(256, _round_up(pl.cdiv(rows, 2), 8)))
    elif rows > 8:
        tile = min(tile, max(8, _round_up(pl.cdiv(rows, 2), 8)))

    return max(8, min(tile, _round_up(rows, 8)))


# ----------------------------------------------------------------------------- #
# Pure-JAX reference (also the fallback for lane-sparse hidden)
# ----------------------------------------------------------------------------- #
def _layer_norm_ref(x, gamma, beta, eps):
    x32 = x.astype(jnp.float32)
    mean = jnp.mean(x32, axis=-1, keepdims=True)
    var = jnp.mean(jnp.square(x32 - mean), axis=-1, keepdims=True)
    y = (x32 - mean) * jax.lax.rsqrt(var + eps)
    return (y * gamma.astype(jnp.float32) + beta.astype(jnp.float32)).astype(x.dtype)


# ----------------------------------------------------------------------------- #
# Pallas wrapper
# ----------------------------------------------------------------------------- #
def pallas_layer_norm(x, gamma, beta, *, eps=1e-5):
    orig_shape = x.shape
    hidden = orig_shape[-1]

    # Lane-sparse hidden -> masked partial stores, idle lanes; XLA is faster.
    if hidden % 128 != 0:
        return _layer_norm_ref(x, gamma, beta, eps)

    rows = math.prod(orig_shape[:-1]) if len(orig_shape) > 1 else 1
    itemsize = jnp.dtype(x.dtype).itemsize
    x2 = x.reshape(rows, hidden)

    vmem_cap = _vmem_capacity_bytes()
    tile = _choose_tile_rows(rows, hidden, itemsize, vmem_cap)
    # Ragged last block: OOB reads are unspecified (rows are independent, so
    # garbage rows are harmless) and OOB writes are dropped. No host pad/slice.
    grid = (pl.cdiv(rows, tile),)

    gamma2 = gamma.astype(jnp.float32).reshape(1, hidden)
    beta2 = beta.astype(jnp.float32).reshape(1, hidden)

    kernel = functools.partial(_layer_norm_kernel,
                               eps=float(eps), inv_h=1.0 / float(hidden))

    # VMEM budget: double-buffered in/out tiles + f32 temporaries + gamma/beta.
    io_bytes = 2 * 2 * tile * hidden * itemsize
    scratch_bytes = 2 * tile * hidden * 4
    gb_bytes = 2 * hidden * 4
    vmem_limit = int(1.25 * (io_bytes + scratch_bytes + gb_bytes)) + (2 << 20)
    vmem_limit = max(vmem_limit, 32 << 20)                       # compiler headroom
    vmem_limit = min(vmem_limit, max(vmem_cap - (8 << 20), 32 << 20))

    out = pl.pallas_call(
        kernel,
        out_shape=jax.ShapeDtypeStruct((rows, hidden), x.dtype),
        grid=grid,
        in_specs=[
            pl.BlockSpec((tile, hidden), lambda i: (i, 0)),   # x: streamed row tiles
            pl.BlockSpec((1, hidden), lambda i: (0, 0)),      # gamma: resident
            pl.BlockSpec((1, hidden), lambda i: (0, 0)),      # beta: resident
        ],
        out_specs=pl.BlockSpec((tile, hidden), lambda i: (i, 0)),
        compiler_params=pltpu.CompilerParams(
            dimension_semantics=("parallel",),
            vmem_limit_bytes=vmem_limit,
        ),
    )(x2, gamma2, beta2)

    return out.reshape(orig_shape)


# ----------------------------------------------------------------------------- #
# Full forward (get_params in JAX + Pallas LayerNorm), jitted
# ----------------------------------------------------------------------------- #
@functools.partial(jax.jit, static_argnames=("eps",))
def trans_fc_norm_forward(x, weight_small, bias_small, width_weight,
                          residual_weight, residual_bias, *, eps=1e-5):
    gamma, beta = get_params(weight_small, bias_small, width_weight,
                             residual_weight, residual_bias)
    return pallas_layer_norm(x, gamma, beta, eps=eps)


if __name__ == "__main__":
    key = jax.random.PRNGKey(0)
    batch, seq = 2, 23               # rows = 46: 2-step grid + ragged last block
    small_dim, hidden = 64, 128      # normalized_shape = hidden (lane-dense)
    eps = 1e-5

    k1, k2, k3, k4, k5, k6 = jax.random.split(key, 6)
    x = jax.random.normal(k1, (batch, seq, hidden), dtype=jnp.float32)
    weight_small = jax.random.normal(k2, (small_dim,), dtype=jnp.float32)
    bias_small = jax.random.normal(k3, (small_dim,), dtype=jnp.float32)

    # Width-expansion weight, row-normalized like normalized_uniform_init('rand').
    ww = jax.random.uniform(k4, (hidden - small_dim, small_dim), dtype=jnp.float32)
    width_weight = ww / jnp.sum(ww, axis=-1, keepdims=True)

    # Residual perturbations (residual=True path, residual_noise=0.01).
    residual_weight = jax.random.uniform(k5, (hidden,), minval=-0.01, maxval=0.01,
                                         dtype=jnp.float32)
    residual_bias = jax.random.uniform(k6, (hidden,), minval=-0.01, maxval=0.01,
                                       dtype=jnp.float32)

    out = trans_fc_norm_forward(x, weight_small, bias_small, width_weight,
                                residual_weight, residual_bias, eps=eps)
    out = jax.block_until_ready(out)

    gamma, beta = get_params(weight_small, bias_small, width_weight,
                             residual_weight, residual_bias)
    ref = _layer_norm_ref(x, gamma, beta, eps)

    assert out.shape == x.shape
    assert bool(jnp.allclose(out, ref, atol=1e-4, rtol=1e-4)), \
        "Pallas LayerNorm mismatch vs reference"
    print("KERNEL_OK")
</pallas_src>

<mosaic_0001>
module attributes {stable_mosaic.version = 11 : i64} {
  func.func @_layer_norm_kernel(%arg0: i32, %arg1: memref<24x128xf32, #tpu.memory_space<vmem>>, %arg2: memref<1x128xf32, #tpu.memory_space<vmem>>, %arg3: memref<1x128xf32, #tpu.memory_space<vmem>>, %arg4: memref<24x128xf32, #tpu.memory_space<vmem>>) attributes {dimension_semantics = [#tpu.dimension_semantics<parallel>], iteration_bounds = array<i64: 2>, scalar_prefetch = 0 : i64, scratch_operands = 0 : i64, tpu.core_type = #tpu.core_type<tc>, window_params = [{transform_indices = @transform_0, window_bounds = array<i64: 24, 128>}, {pipeline_mode = #tpu.pipeline_mode<synchronous>, transform_indices = @transform_1, window_bounds = array<i64: 1, 128>}, {pipeline_mode = #tpu.pipeline_mode<synchronous>, transform_indices = @transform_2, window_bounds = array<i64: 1, 128>}, {transform_indices = @transform_3, window_bounds = array<i64: 24, 128>}]} {
    %c0 = arith.constant 0 : index
    %c0_0 = arith.constant 0 : index
    %0 = vector.load %arg1[%c0, %c0_0] : memref<24x128xf32, #tpu.memory_space<vmem>>, vector<24x128xf32>
    %cst = arith.constant dense<0.000000e+00> : vector<24xf32>
    %1 = vector.multi_reduction <add>, %0, %cst [1] : vector<24x128xf32> to vector<24xf32>
    %2 = vector.shape_cast %1 : vector<24xf32> to vector<24x1xf32>
    %3 = arith.mulf %0, %0 : vector<24x128xf32>
    %cst_1 = arith.constant dense<0.000000e+00> : vector<24xf32>
    %4 = vector.multi_reduction <add>, %3, %cst_1 [1] : vector<24x128xf32> to vector<24xf32>
    %5 = vector.shape_cast %4 : vector<24xf32> to vector<24x1xf32>
    %cst_2 = arith.constant 7.812500e-03 : f32
    %6 = vector.broadcast %cst_2 : f32 to vector<24x1xf32>
    %7 = arith.mulf %2, %6 : vector<24x1xf32>
    %cst_3 = arith.constant 7.812500e-03 : f32
    %8 = vector.broadcast %cst_3 : f32 to vector<24x1xf32>
    %9 = arith.mulf %5, %8 : vector<24x1xf32>
    %10 = arith.mulf %7, %7 : vector<24x1xf32>
    %11 = arith.subf %9, %10 : vector<24x1xf32>
    %cst_4 = arith.constant 0.000000e+00 : f32
    %12 = vector.broadcast %cst_4 : f32 to vector<24x1xf32>
    %13 = arith.maximumf %11, %12 : vector<24x1xf32>
    %cst_5 = arith.constant 9.99999974E-6 : f32
    %14 = vector.broadcast %cst_5 : f32 to vector<24x1xf32>
    %15 = arith.addf %13, %14 : vector<24x1xf32>
    %16 = math.rsqrt %15 : vector<24x1xf32>
    %17 = vector.broadcast %7 : vector<24x1xf32> to vector<24x128xf32>
    %18 = arith.subf %0, %17 : vector<24x128xf32>
    %19 = vector.broadcast %16 : vector<24x1xf32> to vector<24x128xf32>
    %20 = arith.mulf %18, %19 : vector<24x128xf32>
    %c0_6 = arith.constant 0 : index
    %c0_7 = arith.constant 0 : index
    %21 = vector.load %arg2[%c0_6, %c0_7] : memref<1x128xf32, #tpu.memory_space<vmem>>, vector<1x128xf32>
    %22 = vector.broadcast %21 : vector<1x128xf32> to vector<24x128xf32>
    %23 = arith.mulf %20, %22 : vector<24x128xf32>
    %c0_8 = arith.constant 0 : index
    %c0_9 = arith.constant 0 : index
    %24 = vector.load %arg3[%c0_8, %c0_9] : memref<1x128xf32, #tpu.memory_space<vmem>>, vector<1x128xf32>
    %25 = vector.broadcast %24 : vector<1x128xf32> to vector<24x128xf32>
    %26 = arith.addf %23, %25 : vector<24x128xf32>
    %c0_10 = arith.constant 0 : index
    %c0_11 = arith.constant 0 : index
    %27 = vector.load %arg4[%c0_10, %c0_11] : memref<24x128xf32, #tpu.memory_space<vmem>>, vector<24x128xf32>
    tpu.vector_store %arg4[%c0_10, %c0_11], %26 {strides = array<i32>} : memref<24x128xf32, #tpu.memory_space<vmem>>, vector<24x128xf32>,
    return
  }
  func.func @transform_0(%arg0: i32) -> (i32, i32) {
    %c0_i32 = arith.constant 0 : i32
    %c0_i32_0 = arith.constant 0 : i32
    return %arg0, %c0_i32 : i32, i32
  }
  func.func @transform_1(%arg0: i32) -> (i32, i32) {
    %c0_i32 = arith.constant 0 : i32
    %c0_i32_0 = arith.constant 0 : i32
    %c0_i32_1 = arith.constant 0 : i32
    return %c0_i32, %c0_i32_0 : i32, i32
  }
  func.func @transform_2(%arg0: i32) -> (i32, i32) {
    %c0_i32 = arith.constant 0 : i32
    %c0_i32_0 = arith.constant 0 : i32
    %c0_i32_1 = arith.constant 0 : i32
    return %c0_i32, %c0_i32_0 : i32, i32
  }
  func.func @transform_3(%arg0: i32) -> (i32, i32) {
    %c0_i32 = arith.constant 0 : i32
    %c0_i32_0 = arith.constant 0 : i32
    return %arg0, %c0_i32 : i32, i32
  }
}

</mosaic_0001>

<bundles_post_ra>
// kernel: trans_fc_norm_forward.1
= control target key start
LH: loop header
LB: loop body
LE: loop exit
PB: predicated region body
PF: predicated region fallthrough
CT: control target
= control target key end

     0   :  { %s351_s12 = smov 0   ;;  %s381_s0 = inlined_call_operand.vmem [shape: f32[46,128], index: 0, kind: input, shape index: {}]   ;;  %s382_s1 = inlined_call_operand.vmem [shape: f32[1,128], index: 1, kind: input, shape index: {}]   ;;  %s383_s2 = inlined_call_operand.vmem [shape: f32[1,128], index: 2, kind: input, shape index: {}]   ;;  %s384_s3 = inlined_call_operand.vmem [shape: f32[46,128], index: 3, kind: output, shape index: {}]  }
   0x1 LB: > { %s298_s13 = sadd.s32 4294967295, %s329_s12   ;;  %p302_p0 = scmp.ge.s32.totalorder %s329_s12, 1  ;;  %s329_s12 = sphi %s351_s12, %s13_s12  }
   0x2   : > { %p138_p1 = scmp.lt.s32.totalorder %s329_s12, 3 }
   0x4   : > { %p139_p2 = pnand %p302_p0, %p138_p1 }
   0x5   : > { %s162_s14 = smul.u32 (!%p139_p2), 3, %s298_s13  ;;  %v305_v32 = vld [vmem:[%s382_s1] ss:$0 sm:$0xff] (!%p139_p2) }
   0x6   : > { %142 = sbr.rel (%p139_p2) target bundleno = 194 (0xc2), region = 32  ;;  %v306_v34 = vld [vmem:[%s383_s2] ss:$0 sm:$0xff] (!%p139_p2) }
   0x7   : > { %p163_p3 = scmp.lt.s32.totalorder (!%p139_p2), %s162_s14, 5 }
   0xd   : > { %s386_s14 = smov (!%p163_p3, %s162_s14), 5 }
   0xe   : > { %s303_s15 = sshll.u32 %s386_s14, 3 }
   0xf   : > { %s166_s18 = scalar_lea.vmem %s381_s0, %s303_s15  ;;  %s172_s25 = scalar_lea.vmem %s384_s3, %s303_s15 }
  0x10   : > { %v176_v0 = vld [vmem:[%s166_s18 + $0x10] sm:$0xff]  ;;  %v174_v1 = vld [vmem:[%s166_s18] sm:$0xff]  ;;  %v175_v3 = vld [vmem:[%s166_s18 + $0x8] sm:$0xff] }
  0x11   : > { %181 = vadd.xlane.f32.xlu1 %v176_v0  ;;  %177 = vadd.xlane.f32.xlu0 %v174_v1  ;;  %v183_v2 = vmul.f32 %v174_v1, %v174_v1  ;;  %v184_v4 = vmul.f32 %v175_v3, %v175_v3  ;;  %v185_v5 = vmul.f32 %v176_v0, %v176_v0 }
  0x15   : > { %179 = vadd.xlane.f32.xlu0 %v175_v3  ;;  %186 = vadd.xlane.f32.xlu1 %v183_v2 }
  0x19   : > { %188 = vadd.xlane.f32.xlu0 %v184_v4  ;;  %190 = vadd.xlane.f32.xlu1 %v185_v5 }
  0x9e   : > { %v182_v6 = vpop.xlane.xlu1 %181  ;;  %v178_v7 = vpop.xlane.xlu0 %177 }
  0x9f   : > { %v192_v8 = vmul.f32 0.0078125, %v178_v7  ;;  %v194_v9 = vmul.f32 0.0078125, %v182_v6 }
  0xa1   : > { %v198_v12 = vmul.f32 %v192_v8, %v192_v8  ;;  %v200_v16 = vmul.f32 %v194_v9, %v194_v9  ;;  %v213_v30 = vsub.f32 %v174_v1, %v192_v8  ;;  %v215_v38 = vsub.f32 %v176_v0, %v194_v9 }
  0xa2   : > { %v180_v10 = vpop.xlane.xlu0 %179  ;;  %v187_v11 = vpop.xlane.xlu1 %186 }
  0xa3   : > { %v193_v13 = vmul.f32 0.0078125, %v180_v10  ;;  %v195_v14 = vmul.f32 0.0078125, %v187_v11 }
  0xa5   : > { %v201_v15 = vsub.f32 %v195_v14, %v198_v12  ;;  %v199_v19 = vmul.f32 %v193_v13, %v193_v13  ;;  %v214_v35 = vsub.f32 %v175_v3, %v193_v13 }
  0xa6   : > { %v189_v17 = vpop.xlane.xlu0 %188  ;;  %v191_v18 = vpop.xlane.xlu1 %190 }
  0xa7   : > { %v204_v20 = vmax.f32 %v201_v15, 0.0  ;;  %v196_v21 = vmul.f32 0.0078125, %v189_v17  ;;  %v197_v22 = vmul.f32 0.0078125, %v191_v18 }
  0xa9   : > { %v207_v23 = vadd.f32 1e-05, %v204_v20  ;;  %v202_v24 = vsub.f32 %v196_v21, %v199_v19  ;;  %v203_v25 = vsub.f32 %v197_v22, %v200_v16 }
  0xab   : > { %317 = vrsqrt.f32 %v207_v23  ;;  %v205_v26 = vmax.f32 %v202_v24, 0.0  ;;  %v206_v27 = vmax.f32 %v203_v25, 0.0 }
  0xad   : > { %v208_v28 = vadd.f32 1e-05, %v205_v26  ;;  %v209_v29 = vadd.f32 1e-05, %v206_v27 }
  0xaf   : > { %319 = vrsqrt.f32 %v208_v28 }
  0xb0   : > { %321 = vrsqrt.f32 %v209_v29 }
  0xb5   : > { %v318_v31 = vpop.eup %317 }
  0xb6   : > { %v216_v33 = vmul.f32 %v318_v31, %v213_v30 }
  0xb8   : > { %v226_v36 = vmul.f32 %v305_v32, %v216_v33 }
  0xb9   : > { %v320_v37 = vpop.eup %319 }
  0xba   : > { %v322_v39 = vpop.eup %321  ;;  %v236_v40 = vadd.f32 %v306_v34, %v226_v36  ;;  %v217_v41 = vmul.f32 %v320_v37, %v214_v35 }
  0xbb   : > { %v218_v42 = vmul.f32 %v322_v39, %v215_v38 }
  0xbc   : > { %239 = vst [vmem:[%s172_s25] sm:$0xff] %v236_v40  ;;  %v227_v43 = vmul.f32 %v305_v32, %v217_v41 }
  0xbd   : > { %v228_v44 = vmul.f32 %v305_v32, %v218_v42 }
  0xbe   : > { %v237_v45 = vadd.f32 %v306_v34, %v227_v43 }
  0xbf   : > { %v238_v46 = vadd.f32 %v306_v34, %v228_v44 }
  0xc0   : > { %240 = vst [vmem:[%s172_s25 + $0x8] sm:$0xff] %v237_v45 }
  0xc1   : > { %241 = vst [vmem:[%s172_s25 + $0x10] sm:$0xff] %v238_v46 }
  0xc2 PF: > { %s13_s12 = sadd.s32 1, %s329_s12  }
  0xc3   : > { %p10_p4 = scmp.ge.s32.totalorder %s13_s12, 4  }
  0xc5   :  { %12 = sbr.rel (!%p10_p4) target bundleno = 1 (0x1), region = 62 }

</bundles_post_ra>
